<compile_context>
chip_gen: v7x
topology: tpu7x:2x2x1
jax: 0.10.0
libtpu: 0.0.40
codegen_flags: <defaults>
</compile_context>

<pallas_src>
import jax
import jax.numpy as jnp
from jax.experimental import pallas as pl
from jax.experimental.pallas import tpu as pltpu


def _round_up(n, m):
    return ((n + m - 1) // m) * m


def _vmem_capacity_bytes():
    """Physical VMEM per TensorCore; conservative fallback if query fails."""
    try:
        info = pltpu.get_tpu_info()
        cap = int(getattr(info, "vmem_capacity_bytes", 0))
        if cap > 0:
            return cap
    except Exception:
        pass
    return 64 << 20  # v7x size: safe lower bound for every generation


def _estimate_vmem(tm, tn, in_f, rank, x_item, w_item, o_item,
                   x_bufs=2, o_bufs=2, w_bufs=2, u_bufs=2):
    """Conservative VMEM footprint for one pipelined step."""
    stream_x = x_bufs * tm * in_f * x_item
    stream_o = o_bufs * tm * tn * o_item
    vt_res = w_bufs * in_f * rank * w_item               # VT_w.T (resident)
    u_tile = u_bufs * (rank * tn * w_item + tn * 4)      # U_w.T tile + f32 bias
    h_scr = tm * _round_up(rank, 128) * 4                # f32 scratch (lane-padded)
    temps = 2 * tm * tn * 4 + tm * in_f * w_item         # f32 y / y+b, x cast
    return stream_x + stream_o + vt_res + u_tile + h_scr + temps


def _pick_tm(m, tn, in_f, rank, x_item, w_item, o_item, budget):
    """Largest row tile (dtype-aware sublane multiple) that fits the budget."""
    sublane = max(8, 32 // max(x_item, 1))   # f32 -> 8, bf16 -> 16, int8 -> 32
    m_ceil = _round_up(max(m, 1), sublane)
    limit = min(m_ceil, 2048)
    cands = {c for c in (2048, 1024, 512, 256, 128, 64, 32, 16, 8)
             if c % sublane == 0 and c <= limit}
    if m_ceil <= 2048:
        cands.add(m_ceil)
    cands.add(sublane)
    for tm in sorted(cands, reverse=True):
        if _estimate_vmem(tm, tn, in_f, rank, x_item, w_item, o_item) <= budget:
            return tm
    return sublane


def _svd_linear_kernel(x_ref, vtt_ref, ut_ref, b_ref, o_ref, h_ref):
    # x_ref   : (TM, in_features)    streamed per row tile
    # vtt_ref : (in_features, rank)  VMEM-resident (VT_w.T)
    # ut_ref  : (rank, TN)           U_w.T column tile
    # b_ref   : (1, TN) f32          bias tile
    # o_ref   : (TM, TN)             lane-dense output tile
    # h_ref   : (TM, rank) f32       scratch: low-rank intermediate
    @pl.when(pl.program_id(1) == 0)
    def _():
        # h = x @ VT_w.T computed once per row tile; per-tile cast keeps the
        # HBM stream of x at its native dtype.
        x = x_ref[...].astype(vtt_ref.dtype)
        h_ref[...] = jnp.dot(x, vtt_ref[...], preferred_element_type=jnp.float32)

    # y = h @ U_w.T (+ bias), f32 accumulation, single cast at the store.
    y = jnp.dot(h_ref[...].astype(ut_ref.dtype), ut_ref[...],
                preferred_element_type=jnp.float32)
    o_ref[...] = (y + b_ref[...]).astype(o_ref.dtype)


def _svd_linear_call(x2d, vt_s, u_s, b2d, *, tm, tn, rank, out_dtype,
                     vmem_limit, use_buffered, stream_bufs):
    m, in_f = x2d.shape
    out_pad = u_s.shape[1]
    grid = (pl.cdiv(m, tm), pl.cdiv(out_pad, tn))
    n_tiles = grid[1]

    def spec(shape, idx, bufs=None):
        if use_buffered and bufs is not None:
            return pl.BlockSpec(shape, idx, pipeline_mode=pl.Buffered(bufs))
        return pl.BlockSpec(shape, idx)

    sbufs = stream_bufs if use_buffered else None
    w_bufs = 1 if use_buffered else None                     # constant index_map
    u_bufs = (1 if n_tiles == 1 else None) if use_buffered else None

    return pl.pallas_call(
        _svd_linear_kernel,
        out_shape=jax.ShapeDtypeStruct((m, out_pad), out_dtype),
        grid=grid,
        in_specs=[
            spec((tm, in_f), lambda i, j: (i, 0), sbufs),    # x: streamed rows
            spec((in_f, rank), lambda i, j: (0, 0), w_bufs),  # VT_w.T: resident
            spec((rank, tn), lambda i, j: (0, j), u_bufs),    # U_w.T tile
            spec((1, tn), lambda i, j: (0, j), u_bufs),       # bias tile (f32)
        ],
        out_specs=spec((tm, tn), lambda i, j: (i, j), sbufs),
        scratch_shapes=[pltpu.VMEM((tm, rank), jnp.float32)],
        compiler_params=pltpu.CompilerParams(
            dimension_semantics=("parallel", "arbitrary"),
            vmem_limit_bytes=vmem_limit,
        ),
    )(x2d, vt_s, u_s, b2d)


def svd_linear(x, vt_w, u_w, u_b=None, *, compute_dtype=None, out_dtype=None,
               tm=None, tn=None):
    """Fused SVDLinear forward.  x: (..., in_features).

    compute_dtype: optional dtype for the factor matrices (e.g. jnp.bfloat16);
                   x is cast per-tile inside the kernel, matmuls accumulate f32.
    out_dtype    : output dtype (default: x.dtype).
    """
    orig_shape = x.shape
    in_f = orig_shape[-1]
    rank, in_chk = vt_w.shape
    out_f, rank_chk = u_w.shape
    assert in_chk == in_f and rank_chk == rank

    x2d = x.reshape(-1, in_f)          # collapses leading dims only (no copy)
    m = x2d.shape[0]
    out_dtype = jnp.dtype(out_dtype) if out_dtype is not None else x.dtype
    w_dtype = jnp.dtype(compute_dtype) if compute_dtype is not None else vt_w.dtype

    # One-time transforms on the SMALL factors only (x is never touched here).
    out_pad = _round_up(out_f, 128)                 # lane-dense output stores
    vt_s = vt_w.T.astype(w_dtype)                   # (in_f, rank)
    u_s = u_w.T.astype(w_dtype)                     # (rank, out_f)
    if u_b is None:
        b2d = jnp.zeros((1, out_f), jnp.float32)
    else:
        b2d = u_b.reshape(1, out_f).astype(jnp.float32)
    if out_pad != out_f:
        u_s = jnp.pad(u_s, ((0, 0), (0, out_pad - out_f)))
        b2d = jnp.pad(b2d, ((0, 0), (0, out_pad - out_f)))

    # Generation-aware VMEM budgeting.
    cap = _vmem_capacity_bytes()
    budget = cap // 2                   # ~32 MiB on v7x, ~64 MiB on v5e/v6e
    vmem_limit = int(cap * 0.8)         # headroom below physical VMEM

    x_item = x2d.dtype.itemsize
    w_item = jnp.dtype(w_dtype).itemsize
    o_item = out_dtype.itemsize

    if tn is None:
        tn = min(out_pad, 2048)
    if tm is None:
        tm = _pick_tm(m, tn, in_f, rank, x_item, w_item, o_item, budget)

    # Deeper pipelining for small row tiles (DMA latency > tiny low-rank compute).
    grid_m = pl.cdiv(m, tm)
    deep = (tm <= 256 and grid_m > 2 and
            _estimate_vmem(tm, tn, in_f, rank, x_item, w_item, o_item,
                           x_bufs=3, o_bufs=3) <= budget)
    stream_bufs = 3 if deep else None

    out = None
    last_err = None
    for use_buffered in (True, False):
        try:
            out = _svd_linear_call(
                x2d, vt_s, u_s, b2d, tm=tm, tn=tn, rank=rank,
                out_dtype=out_dtype, vmem_limit=vmem_limit,
                use_buffered=use_buffered, stream_bufs=stream_bufs)
            break
        except Exception as e:  # pipeline_mode unsupported -> default buffering
            last_err = e
            out = None
    if out is None:
        raise last_err

    if out_pad != out_f:
        out = out[:, :out_f]
    return out.reshape(*orig_shape[:-1], out_f)


if __name__ == "__main__":
    key = jax.random.PRNGKey(0)

    def ref_fwd(x, vt_w, u_w, u_b):
        h = jnp.einsum("...k,rk->...r", x, vt_w)
        return jnp.einsum("...r,or->...o", h, u_w) + u_b

    # Case 1: SVDLinear(in=32, out=32, rank=8), x: (batch=2, seq=8, 32), f32.
    batch, seq, in_f, out_f, rank = 2, 8, 32, 32, 8
    kx, kvt, ku, kb, kx2 = jax.random.split(key, 5)
    x = jax.random.normal(kx, (batch, seq, in_f), jnp.float32)
    vt_w = jax.random.normal(kvt, (rank, in_f), jnp.float32) * 0.1
    u_w = jax.random.normal(ku, (out_f, rank), jnp.float32) * 0.1
    u_b = jax.random.normal(kb, (out_f,), jnp.float32) * 0.1

    ref = ref_fwd(x, vt_w, u_w, u_b)
    y = jax.block_until_ready(svd_linear(x, vt_w, u_w, u_b))
    assert y.shape == (batch, seq, out_f)
    assert jnp.allclose(y, ref, atol=1e-4, rtol=1e-4)

    # Case 2: bf16 factors (x stays f32 in HBM, cast per-tile in the kernel).
    y_bf16 = jax.block_until_ready(
        svd_linear(x, vt_w, u_w, u_b, compute_dtype=jnp.bfloat16))
    assert y_bf16.shape == (batch, seq, out_f)
    assert jnp.allclose(y_bf16, ref, atol=5e-2, rtol=5e-2)

    # Case 3: ragged M (3*5 = 15 rows, not a multiple of 8) and out_features
    #         already a lane multiple (no padding / slicing path).
    in3, out3, rank3 = 128, 256, 16
    x3 = jax.random.normal(kx2, (3, 5, in3), jnp.float32)
    vt3 = jax.random.normal(kvt, (rank3, in3), jnp.float32) * 0.05
    u3 = jax.random.normal(ku, (out3, rank3), jnp.float32) * 0.05
    b3 = jax.random.normal(kb, (out3,), jnp.float32) * 0.05
    ref3 = ref_fwd(x3, vt3, u3, b3)
    y3 = jax.block_until_ready(svd_linear(x3, vt3, u3, b3))
    assert y3.shape == (3, 5, out3)
    assert jnp.allclose(y3, ref3, atol=1e-4, rtol=1e-4)

    print("KERNEL_OK")
</pallas_src>

<mosaic_0001>
module attributes {stable_mosaic.version = 11 : i64} {
  func.func @_svd_linear_kernel(%arg0: i32, %arg1: i32, %arg2: memref<16x32xf32, #tpu.memory_space<vmem>>, %arg3: memref<32x8xf32, #tpu.memory_space<vmem>>, %arg4: memref<8x128xf32, #tpu.memory_space<vmem>>, %arg5: memref<1x128xf32, #tpu.memory_space<vmem>>, %arg6: memref<16x128xf32, #tpu.memory_space<vmem>>, %arg7: memref<16x8xf32, #tpu.memory_space<vmem>>) attributes {dimension_semantics = [#tpu.dimension_semantics<parallel>, #tpu.dimension_semantics<arbitrary>], iteration_bounds = array<i64: 1, 1>, scalar_prefetch = 0 : i64, scratch_operands = 1 : i64, tpu.core_type = #tpu.core_type<tc>, window_params = [{transform_indices = @transform_0, window_bounds = array<i64: 16, 32>}, {pipeline_mode = #tpu.pipeline_mode<synchronous>, transform_indices = @transform_1, window_bounds = array<i64: 32, 8>}, {pipeline_mode = #tpu.pipeline_mode<synchronous>, transform_indices = @transform_2, window_bounds = array<i64: 8, 128>}, {pipeline_mode = #tpu.pipeline_mode<synchronous>, transform_indices = @transform_3, window_bounds = array<i64: 1, 128>}, {transform_indices = @transform_4, window_bounds = array<i64: 16, 128>}]} {
    %c0_i32 = arith.constant 0 : i32
    %0 = arith.cmpi eq, %arg1, %c0_i32 : i32
    %1 = arith.extui %0 : i1 to i32
    %c0_i32_0 = arith.constant 0 : i32
    %2 = arith.cmpi ne, %1, %c0_i32_0 : i32
    scf.if %2 {
      %c0_8 = arith.constant 0 : index
      %c0_9 = arith.constant 0 : index
      %10 = vector.load %arg2[%c0_8, %c0_9] : memref<16x32xf32, #tpu.memory_space<vmem>>, vector<16x32xf32>
      %c0_10 = arith.constant 0 : index
      %c0_11 = arith.constant 0 : index
      %11 = vector.load %arg3[%c0_10, %c0_11] : memref<32x8xf32, #tpu.memory_space<vmem>>, vector<32x8xf32>
      %cst_12 = arith.constant dense<0.000000e+00> : vector<16x8xf32>
      %12 = tpu.matmul %10, %11, %cst_12 {dimension_numbers = #tpu.dot_dimension_numbers<[1], [0], [0], [1], [0, 0, 1, 1], [], []>} : vector<16x32xf32>, vector<32x8xf32>, vector<16x8xf32> -> vector<16x8xf32>
      %c0_13 = arith.constant 0 : index
      %c0_14 = arith.constant 0 : index
      %13 = vector.load %arg7[%c0_13, %c0_14] : memref<16x8xf32, #tpu.memory_space<vmem>>, vector<16x8xf32>
      tpu.vector_store %arg7[%c0_13, %c0_14], %12 {strides = array<i32>} : memref<16x8xf32, #tpu.memory_space<vmem>>, vector<16x8xf32>,
    } else {
    }
    %c0 = arith.constant 0 : index
    %c0_1 = arith.constant 0 : index
    %3 = vector.load %arg7[%c0, %c0_1] : memref<16x8xf32, #tpu.memory_space<vmem>>, vector<16x8xf32>
    %c0_2 = arith.constant 0 : index
    %c0_3 = arith.constant 0 : index
    %4 = vector.load %arg4[%c0_2, %c0_3] : memref<8x128xf32, #tpu.memory_space<vmem>>, vector<8x128xf32>
    %cst = arith.constant dense<0.000000e+00> : vector<16x128xf32>
    %5 = tpu.matmul %3, %4, %cst {dimension_numbers = #tpu.dot_dimension_numbers<[1], [0], [0], [1], [0, 0, 1, 1], [], []>} : vector<16x8xf32>, vector<8x128xf32>, vector<16x128xf32> -> vector<16x128xf32>
    %c0_4 = arith.constant 0 : index
    %c0_5 = arith.constant 0 : index
    %6 = vector.load %arg5[%c0_4, %c0_5] : memref<1x128xf32, #tpu.memory_space<vmem>>, vector<1x128xf32>
    %7 = vector.broadcast %6 : vector<1x128xf32> to vector<16x128xf32>
    %8 = arith.addf %5, %7 : vector<16x128xf32>
    %c0_6 = arith.constant 0 : index
    %c0_7 = arith.constant 0 : index
    %9 = vector.load %arg6[%c0_6, %c0_7] : memref<16x128xf32, #tpu.memory_space<vmem>>, vector<16x128xf32>
    tpu.vector_store %arg6[%c0_6, %c0_7], %8 {strides = array<i32>} : memref<16x128xf32, #tpu.memory_space<vmem>>, vector<16x128xf32>,
    return
  }
  func.func @transform_0(%arg0: i32, %arg1: i32) -> (i32, i32) {
    %c0_i32 = arith.constant 0 : i32
    %c0_i32_0 = arith.constant 0 : i32
    return %arg0, %c0_i32 : i32, i32
  }
  func.func @transform_1(%arg0: i32, %arg1: i32) -> (i32, i32) {
    %c0_i32 = arith.constant 0 : i32
    %c0_i32_0 = arith.constant 0 : i32
    %c0_i32_1 = arith.constant 0 : i32
    return %c0_i32, %c0_i32_0 : i32, i32
  }
  func.func @transform_2(%arg0: i32, %arg1: i32) -> (i32, i32) {
    %c0_i32 = arith.constant 0 : i32
    %c0_i32_0 = arith.constant 0 : i32
    return %c0_i32, %arg1 : i32, i32
  }
  func.func @transform_3(%arg0: i32, %arg1: i32) -> (i32, i32) {
    %c0_i32 = arith.constant 0 : i32
    %c0_i32_0 = arith.constant 0 : i32
    return %c0_i32, %arg1 : i32, i32
  }
  func.func @transform_4(%arg0: i32, %arg1: i32) -> (i32, i32) {
    %c0_i32 = arith.constant 0 : i32
    return %arg0, %arg1 : i32, i32
  }
}

module attributes {stable_mosaic.version = 11 : i64} {
  func.func @_svd_linear_kernel(%arg0: i32, %arg1: i32, %arg2: memref<16x32xf32, #tpu.memory_space<vmem>>, %arg3: memref<32x8xf32, #tpu.memory_space<vmem>>, %arg4: memref<8x128xf32, #tpu.memory_space<vmem>>, %arg5: memref<1x128xf32, #tpu.memory_space<vmem>>, %arg6: memref<16x128xf32, #tpu.memory_space<vmem>>, %arg7: memref<16x8xf32, #tpu.memory_space<vmem>>) attributes {dimension_semantics = [#tpu.dimension_semantics<parallel>, #tpu.dimension_semantics<arbitrary>], iteration_bounds = array<i64: 1, 1>, scalar_prefetch = 0 : i64, scratch_operands = 1 : i64, tpu.core_type = #tpu.core_type<tc>, window_params = [{transform_indices = @transform_0, window_bounds = array<i64: 16, 32>}, {pipeline_mode = #tpu.pipeline_mode<synchronous>, transform_indices = @transform_1, window_bounds = array<i64: 32, 8>}, {transform_indices = @transform_2, window_bounds = array<i64: 8, 128>}, {transform_indices = @transform_3, window_bounds = array<i64: 1, 128>}, {transform_indices = @transform_4, window_bounds = array<i64: 16, 128>}]} {
    %c0_i32 = arith.constant 0 : i32
    %0 = arith.cmpi eq, %arg1, %c0_i32 : i32
    %1 = arith.extui %0 : i1 to i32
    %c0_i32_0 = arith.constant 0 : i32
    %2 = arith.cmpi ne, %1, %c0_i32_0 : i32
    scf.if %2 {
      %c0_8 = arith.constant 0 : index
      %c0_9 = arith.constant 0 : index
      %10 = vector.load %arg2[%c0_8, %c0_9] : memref<16x32xf32, #tpu.memory_space<vmem>>, vector<16x32xf32>
      %c0_10 = arith.constant 0 : index
      %c0_11 = arith.constant 0 : index
      %11 = vector.load %arg3[%c0_10, %c0_11] : memref<32x8xf32, #tpu.memory_space<vmem>>, vector<32x8xf32>
      %cst_12 = arith.constant dense<0.000000e+00> : vector<16x8xf32>
      %12 = tpu.matmul %10, %11, %cst_12 {dimension_numbers = #tpu.dot_dimension_numbers<[1], [0], [0], [1], [0, 0, 1, 1], [], []>} : vector<16x32xf32>, vector<32x8xf32>, vector<16x8xf32> -> vector<16x8xf32>
      %c0_13 = arith.constant 0 : index
      %c0_14 = arith.constant 0 : index
      %13 = vector.load %arg7[%c0_13, %c0_14] : memref<16x8xf32, #tpu.memory_space<vmem>>, vector<16x8xf32>
      tpu.vector_store %arg7[%c0_13, %c0_14], %12 {strides = array<i32>} : memref<16x8xf32, #tpu.memory_space<vmem>>, vector<16x8xf32>,
    } else {
    }
    %c0 = arith.constant 0 : index
    %c0_1 = arith.constant 0 : index
    %3 = vector.load %arg7[%c0, %c0_1] : memref<16x8xf32, #tpu.memory_space<vmem>>, vector<16x8xf32>
    %c0_2 = arith.constant 0 : index
    %c0_3 = arith.constant 0 : index
    %4 = vector.load %arg4[%c0_2, %c0_3] : memref<8x128xf32, #tpu.memory_space<vmem>>, vector<8x128xf32>
    %cst = arith.constant dense<0.000000e+00> : vector<16x128xf32>
    %5 = tpu.matmul %3, %4, %cst {dimension_numbers = #tpu.dot_dimension_numbers<[1], [0], [0], [1], [0, 0, 1, 1], [], []>} : vector<16x8xf32>, vector<8x128xf32>, vector<16x128xf32> -> vector<16x128xf32>
    %c0_4 = arith.constant 0 : index
    %c0_5 = arith.constant 0 : index
    %6 = vector.load %arg5[%c0_4, %c0_5] : memref<1x128xf32, #tpu.memory_space<vmem>>, vector<1x128xf32>
    %7 = vector.broadcast %6 : vector<1x128xf32> to vector<16x128xf32>
    %8 = arith.addf %5, %7 : vector<16x128xf32>
    %c0_6 = arith.constant 0 : index
    %c0_7 = arith.constant 0 : index
    %9 = vector.load %arg6[%c0_6, %c0_7] : memref<16x128xf32, #tpu.memory_space<vmem>>, vector<16x128xf32>
    tpu.vector_store %arg6[%c0_6, %c0_7], %8 {strides = array<i32>} : memref<16x128xf32, #tpu.memory_space<vmem>>, vector<16x128xf32>,
    return
  }
  func.func @transform_0(%arg0: i32, %arg1: i32) -> (i32, i32) {
    %c0_i32 = arith.constant 0 : i32
    %c0_i32_0 = arith.constant 0 : i32
    return %arg0, %c0_i32 : i32, i32
  }
  func.func @transform_1(%arg0: i32, %arg1: i32) -> (i32, i32) {
    %c0_i32 = arith.constant 0 : i32
    %c0_i32_0 = arith.constant 0 : i32
    %c0_i32_1 = arith.constant 0 : i32
    return %c0_i32, %c0_i32_0 : i32, i32
  }
  func.func @transform_2(%arg0: i32, %arg1: i32) -> (i32, i32) {
    %c0_i32 = arith.constant 0 : i32
    %c0_i32_0 = arith.constant 0 : i32
    return %c0_i32, %arg1 : i32, i32
  }
  func.func @transform_3(%arg0: i32, %arg1: i32) -> (i32, i32) {
    %c0_i32 = arith.constant 0 : i32
    %c0_i32_0 = arith.constant 0 : i32
    return %c0_i32, %arg1 : i32, i32
  }
  func.func @transform_4(%arg0: i32, %arg1: i32) -> (i32, i32) {
    %c0_i32 = arith.constant 0 : i32
    return %arg0, %arg1 : i32, i32
  }
}

</mosaic_0001>

<bundles_post_ra>
// kernel: tpu_custom_call.1
= control target key start
LH: loop header
LB: loop body
LE: loop exit
PB: predicated region body
PF: predicated region fallthrough
CT: control target
= control target key end

     0   :  { %vm28_vm0 = vcmask 261120   ;;  %s352_s0 = inlined_call_operand.vmem [shape: f32[16,32], index: 0, kind: input, shape index: {}]   ;;  %s353_s1 = inlined_call_operand.vmem [shape: f32[32,8], index: 1, kind: input, shape index: {}]   ;;  %s354_s2 = inlined_call_operand.vmem [shape: f32[8,128], index: 2, kind: input, shape index: {}]   ;;  %s355_s3 = inlined_call_operand.vmem [shape: f32[1,128], index: 3, kind: input, shape index: {}]   ;;  %s356_s4 = inlined_call_operand.hbm [shape: f32[16,128], index: 4, kind: output, shape index: {}]  }
   0x1   :  { %v24_v0 = vld [vmem:[%s353_s1] sm:$0xff]  ;;  %v25_v1 = vld [vmem:[%s353_s1 + $0x8] sm:$0xff]  ;;  %v26_v2 = vld [vmem:[%s353_s1 + $0x10] sm:$0xff] }
   0x2   :  { %v253_v3 = vpack.c.bf16 %v25_v1, %v24_v0  ;;  %v27_v4 = vld [vmem:[%s353_s1 + $0x18] sm:$0xff]  ;;  %v22_v5 = vld [vmem:[%s352_s0] sm:$0xff] }
   0x3   :  { %v257_v6 = vpack.c.bf16 %v27_v4, %v26_v2  ;;  %245 = vmatprep.mubr.msk.f32.mxu0 %vm28_vm0, %v22_v5 }
   0x4   :  { %9 = vsyncpa [#allocation4], 0  ;;  %254 = vmatprep.subr.bf16.mxu0 %v253_v3  ;;  %v23_v7 = vld [vmem:[%s352_s0 + $0x8] sm:$0xff]  ;;  %v115_v8 = vld [vmem:[%s354_s2] sm:$0xff]  ;;  %vm110_vm1 = vcmask 64512   ;;  %s288_s0 = smov [#allocation3]  }
   0x5   :  { %256 = vmatpush3.bf16.msra.mxu0 %v253_v3  ;;  %248 = vmatprep.subr.mxu1 %v115_v8  ;;  %v225_v13 = vld [vmem:[%s355_s3] ss:$0 sm:$0xff]  ;;  %s212_s30 = sshll.u32 %s288_s0, 4  ;;  %s213_s30 = int_to_ptr.vmem [resolvable:$true] %s212_s30 }
   0x6   :  { %258 = vmatprep.subr.bf16.mxu0 %v257_v6  ;;  %249 = vmatpush3.msra.mxu1 %v115_v8  ;;  %s264_s2 = scalar_lea.vmem %s213_s30, 256  ;;  %p269_p1 = scmp.lt.s32.totalorder %s213_s30, %s213_s30 }
   0x7   :  { %p265_p0 = scmp.ne.s32.totalorder %s213_s30, %s264_s2  ;;  %p270_p2 = scmp.lt.s32.totalorder %s264_s2, %s264_s2 }
   0x9   :  { %260 = vmatpush3.bf16.msra.mxu0 %v257_v6  ;;  %p271_p3 = por %p270_p2, %p269_p1 }
   0xb   :  { %p272_p4 = pnand %p271_p3, %p265_p0 }
   0xc   :  { %246 = vmatmul.mubr.msk.f32.vlgmr.msra.gmra.mrb[0].mxu0 %vm28_vm0, %v23_v7 }
  0xdf   :  { %v247_v9 = vpop.f32.mrb[0].mxu0 }
  0xe0   :  { %112 = vst.msk [vmem:[#allocation2 + $0x8] sm:$0xff] %vm110_vm1, %v247_v9  ;;  %v101_v10 = vpop.f32.mrb[1].mxu0 }
  0xe1   :  { %111 = vst.msk [vmem:[#allocation2] sm:$0xff] %vm110_vm1, %v101_v10 }
  0xe7   :  { %v114_v12 = vld [vmem:[#allocation2 + $0x8] sm:$0xff] }
  0xe8   :  { %v113_v11 = vld [vmem:[#allocation2] sm:$0xff] }
  0xe9   :  { %250 = vmatprep.mubr.msk.f32.mxu1 %vm110_vm1, %v113_v11 }
  0xea   :  { %251 = vmatmul.mubr.msk.f32.vlgmr.msra.gmra.mrb[0].mxu1 %vm110_vm1, %v114_v12 }
 0x1bd   :  { %v252_v14 = vpop.f32.mrb[0].mxu1 }
 0x1be   :  { %v202_v15 = vadd.f32 %v252_v14, %v225_v13  ;;  %v196_v16 = vpop.f32.mrb[1].mxu1 }
 0x1bf   :  { %v197_v17 = vadd.f32 %v225_v13, %v196_v16 }
 0x1c0   :  { %206 = vst [vmem:[#allocation3 + $0x8] sm:$0xff] %v202_v15 }
 0x1c1   :  { %205 = vst [vmem:[#allocation3] sm:$0xff] %v197_v17 }
 0x1c2   :  { %275 = shalt.err (!%p272_p4)
}
 0x1c3   :  { %s276_s3 = scalar_lea.hbm %s356_s4, 256 }
 0x1c4   :  { %p277_p5 = scmp.ne.s32.totalorder %s356_s4, %s276_s3  ;;  %p280_p6 = scmp.lt.u32.totalorder %s276_s3, %s356_s4 }
 0x1c6   :  { %p282_p7 = pnand %p280_p6, %p277_p5 }
 0x1c8   :  { %285 = shalt.err (!%p282_p7)
}
 0x1c9   :  { %s289_s11 = smov 128   ;;  %s290_s12 = smov 8  }
 0x1ca   :  { %218 = dma.vmem_to_hbm [thread:$0]  %s213_s30, 256, %s356_s4, [#allocation4], %s289_s11, %s289_s11, %s290_s12  }
 0x1cb   :  { %286 = dma.done.wait [#allocation4], 256  }
 0x1cc   :  { %287 = vsyncadd [#allocation4], 4294967040 }
 0x1cd   :  { %222 = vsyncpa [#allocation4], 1 }

// kernel: tpu_custom_call.1
= control target key start
LH: loop header
LB: loop body
LE: loop exit
PB: predicated region body
PF: predicated region fallthrough
CT: control target
= control target key end

     0   :  { %vm28_vm0 = vcmask 261120   ;;  %s352_s0 = inlined_call_operand.vmem [shape: f32[16,32], index: 0, kind: input, shape index: {}]   ;;  %s353_s1 = inlined_call_operand.vmem [shape: f32[32,8], index: 1, kind: input, shape index: {}]   ;;  %s354_s2 = inlined_call_operand.vmem [shape: f32[8,128], index: 2, kind: input, shape index: {}]   ;;  %s355_s3 = inlined_call_operand.vmem [shape: f32[1,128], index: 3, kind: input, shape index: {}]   ;;  %s356_s4 = inlined_call_operand.hbm [shape: f32[16,128], index: 4, kind: output, shape index: {}]  }
   0x1   :  { %v24_v0 = vld [vmem:[%s353_s1] sm:$0xff]  ;;  %v25_v1 = vld [vmem:[%s353_s1 + $0x8] sm:$0xff]  ;;  %v26_v2 = vld [vmem:[%s353_s1 + $0x10] sm:$0xff] }
   0x2   :  { %v253_v3 = vpack.c.bf16 %v25_v1, %v24_v0  ;;  %v27_v4 = vld [vmem:[%s353_s1 + $0x18] sm:$0xff]  ;;  %v22_v5 = vld [vmem:[%s352_s0] sm:$0xff] }
   0x3   :  { %v257_v6 = vpack.c.bf16 %v27_v4, %v26_v2  ;;  %245 = vmatprep.mubr.msk.f32.mxu0 %vm28_vm0, %v22_v5 }
   0x4   :  { %9 = vsyncpa [#allocation4], 0  ;;  %254 = vmatprep.subr.bf16.mxu0 %v253_v3  ;;  %v23_v7 = vld [vmem:[%s352_s0 + $0x8] sm:$0xff]  ;;  %v115_v8 = vld [vmem:[%s354_s2] sm:$0xff]  ;;  %vm110_vm1 = vcmask 64512   ;;  %s288_s0 = smov [#allocation3]  }
   0x5   :  { %256 = vmatpush3.bf16.msra.mxu0 %v253_v3  ;;  %248 = vmatprep.subr.mxu1 %v115_v8  ;;  %v225_v13 = vld [vmem:[%s355_s3] ss:$0 sm:$0xff]  ;;  %s212_s30 = sshll.u32 %s288_s0, 4  ;;  %s213_s30 = int_to_ptr.vmem [resolvable:$true] %s212_s30 }
   0x6   :  { %258 = vmatprep.subr.bf16.mxu0 %v257_v6  ;;  %249 = vmatpush3.msra.mxu1 %v115_v8  ;;  %s264_s2 = scalar_lea.vmem %s213_s30, 256  ;;  %p269_p1 = scmp.lt.s32.totalorder %s213_s30, %s213_s30 }
   0x7   :  { %p265_p0 = scmp.ne.s32.totalorder %s213_s30, %s264_s2  ;;  %p270_p2 = scmp.lt.s32.totalorder %s264_s2, %s264_s2 }
   0x9   :  { %260 = vmatpush3.bf16.msra.mxu0 %v257_v6  ;;  %p271_p3 = por %p270_p2, %p269_p1 }
   0xb   :  { %p272_p4 = pnand %p271_p3, %p265_p0 }
   0xc   :  { %246 = vmatmul.mubr.msk.f32.vlgmr.msra.gmra.mrb[0].mxu0 %vm28_vm0, %v23_v7 }
  0xdf   :  { %v247_v9 = vpop.f32.mrb[0].mxu0 }
  0xe0   :  { %112 = vst.msk [vmem:[#allocation2 + $0x8] sm:$0xff] %vm110_vm1, %v247_v9  ;;  %v101_v10 = vpop.f32.mrb[1].mxu0 }
  0xe1   :  { %111 = vst.msk [vmem:[#allocation2] sm:$0xff] %vm110_vm1, %v101_v10 }
  0xe7   :  { %v114_v12 = vld [vmem:[#allocation2 + $0x8] sm:$0xff] }
  0xe8   :  { %v113_v11 = vld [vmem:[#allocation2] sm:$0xff] }
  0xe9   :  { %250 = vmatprep.mubr.msk.f32.mxu1 %vm110_vm1, %v113_v11 }
  0xea   :  { %251 = vmatmul.mubr.msk.f32.vlgmr.msra.gmra.mrb[0].mxu1 %vm110_vm1, %v114_v12 }
 0x1bd   :  { %v252_v14 = vpop.f32.mrb[0].mxu1 }
 0x1be   :  { %v202_v15 = vadd.f32 %v252_v14, %v225_v13  ;;  %v196_v16 = vpop.f32.mrb[1].mxu1 }
 0x1bf   :  { %v197_v17 = vadd.f32 %v225_v13, %v196_v16 }
 0x1c0   :  { %206 = vst [vmem:[#allocation3 + $0x8] sm:$0xff] %v202_v15 }
 0x1c1   :  { %205 = vst [vmem:[#allocation3] sm:$0xff] %v197_v17 }
 0x1c2   :  { %275 = shalt.err (!%p272_p4)
}
 0x1c3   :  { %s276_s3 = scalar_lea.hbm %s356_s4, 256 }
 0x1c4   :  { %p277_p5 = scmp.ne.s32.totalorder %s356_s4, %s276_s3  ;;  %p280_p6 = scmp.lt.u32.totalorder %s276_s3, %s356_s4 }
 0x1c6   :  { %p282_p7 = pnand %p280_p6, %p277_p5 }
 0x1c8   :  { %285 = shalt.err (!%p282_p7)
}
 0x1c9   :  { %s289_s11 = smov 128   ;;  %s290_s12 = smov 8  }
 0x1ca   :  { %218 = dma.vmem_to_hbm [thread:$0]  %s213_s30, 256, %s356_s4, [#allocation4], %s289_s11, %s289_s11, %s290_s12  }
 0x1cb   :  { %286 = dma.done.wait [#allocation4], 256  }
 0x1cc   :  { %287 = vsyncadd [#allocation4], 4294967040 }
 0x1cd   :  { %222 = vsyncpa [#allocation4], 1 }

</bundles_post_ra>
